<compile_context>
chip_gen: v7x
topology: tpu7x:2x2x1
jax: 0.10.0
libtpu: 0.0.40
codegen_flags: <defaults>
</compile_context>

<pallas_src>
import functools

import jax
import jax.numpy as jnp
from jax.experimental import pallas as pl
from jax.experimental.pallas import tpu as pltpu


# Logical (PyTorch) sizes.
IN_DIM = 784
H1_DIM = 100
H2_DIM = 52
NUM_CLASSES = 10

# Lane-padded sizes (multiples of 128 on the lane axis).
H1_PAD = 128
H2_PAD = 128
OUT_PAD = 128


# ---------------------------------------------------------------------------
# Fused Pallas kernel: the whole MLP forward pass in one shot.
# ---------------------------------------------------------------------------
def _net2_kernel(x_ref, w1_ref, b1_ref, w2_ref, b2_ref, w3_ref, b3_ref, o_ref,
                 *, num_classes):
    # fc1 + ReLU  (padded hidden lanes come out exactly 0: relu(x@0 + 0) = 0)
    h = jnp.dot(x_ref[...], w1_ref[...],
                preferred_element_type=jnp.float32) + b1_ref[...]
    h = jnp.maximum(h, 0.0)

    # fc2 + ReLU
    h = jnp.dot(h, w2_ref[...],
                preferred_element_type=jnp.float32) + b2_ref[...]
    h = jnp.maximum(h, 0.0)

    # fc3
    logits = jnp.dot(h, w3_ref[...],
                     preferred_element_type=jnp.float32) + b3_ref[...]

    # Mask the padded (fake) class lanes so they contribute ~0 probability,
    # then softmax over the lane axis.
    lane = jax.lax.broadcasted_iota(jnp.int32, logits.shape, 1)
    logits = jnp.where(lane < num_classes, logits, jnp.float32(-1e30))
    m = jnp.max(logits, axis=-1, keepdims=True)
    e = jnp.exp(logits - m)
    o_ref[...] = (e / jnp.sum(e, axis=-1, keepdims=True)).astype(o_ref.dtype)


def net2_forward(params, x):
    """x: (M, 784) f32 -> (M, 10) softmax probabilities."""
    m = x.shape[0]
    kernel = functools.partial(_net2_kernel, num_classes=NUM_CLASSES)
    out_padded = pl.pallas_call(
        kernel,
        out_shape=jax.ShapeDtypeStruct((m, OUT_PAD), jnp.float32),
        grid_spec=pltpu.PrefetchScalarGridSpec(
            num_scalar_prefetch=0,
            grid=(1,),
            in_specs=[
                pl.BlockSpec((m, IN_DIM), lambda i: (0, 0)),
                pl.BlockSpec((IN_DIM, H1_PAD), lambda i: (0, 0)),
                pl.BlockSpec((1, H1_PAD), lambda i: (0, 0)),
                pl.BlockSpec((H1_PAD, H2_PAD), lambda i: (0, 0)),
                pl.BlockSpec((1, H2_PAD), lambda i: (0, 0)),
                pl.BlockSpec((H2_PAD, OUT_PAD), lambda i: (0, 0)),
                pl.BlockSpec((1, OUT_PAD), lambda i: (0, 0)),
            ],
            out_specs=pl.BlockSpec((m, OUT_PAD), lambda i: (0, 0)),
        ),
        compiler_params=pltpu.CompilerParams(
            dimension_semantics=("arbitrary",),
        ),
    )(x, params["w1"], params["b1"], params["w2"], params["b2"],
      params["w3"], params["b3"])
    # Drop the zero-probability padding lanes -> exact Net2 output.
    return out_padded[:, :NUM_CLASSES]


# ---------------------------------------------------------------------------
# Parameter init (weights stored pre-padded to lane-dense shapes).
# ---------------------------------------------------------------------------
def init_params(key):
    k1, k2, k3 = jax.random.split(key, 3)

    def w_init(k, fan_in, fan_out):
        return (jax.random.normal(k, (fan_in, fan_out), jnp.float32) /
                jnp.sqrt(jnp.float32(fan_in)))

    def pad_w(w, rows, cols):
        return jnp.pad(w, ((0, rows - w.shape[0]), (0, cols - w.shape[1])))

    def pad_b(b, cols):
        return jnp.pad(b, (0, cols - b.shape[0])).reshape(1, cols)

    w1 = w_init(k1, IN_DIM, H1_DIM)
    w2 = w_init(k2, H1_DIM, H2_DIM)
    w3 = w_init(k3, H2_DIM, NUM_CLASSES)
    b1 = jnp.zeros((H1_DIM,), jnp.float32)
    b2 = jnp.zeros((H2_DIM,), jnp.float32)
    b3 = jnp.zeros((NUM_CLASSES,), jnp.float32)

    return {
        "w1": pad_w(w1, IN_DIM, H1_PAD),
        "b1": pad_b(b1, H1_PAD),
        "w2": pad_w(w2, H1_PAD, H2_PAD),
        "b2": pad_b(b2, H2_PAD),
        "w3": pad_w(w3, H2_PAD, OUT_PAD),
        "b3": pad_b(b3, OUT_PAD),
    }


if __name__ == "__main__":
    key = jax.random.PRNGKey(0)
    kx, kp = jax.random.split(key)

    # Small batch; 8 keeps the sublane axis fully utilised.
    x = jax.random.normal(kx, (8, IN_DIM), jnp.float32)
    params = init_params(kp)

    fwd = jax.jit(net2_forward)
    out = jax.block_until_ready(fwd(params, x))

    # Reference check against plain-JAX forward.
    h = jnp.maximum(x @ params["w1"][:, :H1_DIM] + 0.0, 0.0)
    h = jnp.maximum(h @ params["w2"][:H1_DIM, :H2_DIM], 0.0)
    logits = h @ params["w3"][:H2_DIM, :NUM_CLASSES]
    ref = jax.nn.softmax(logits, axis=1)

    assert out.shape == (8, NUM_CLASSES), out.shape
    assert bool(jnp.all(jnp.isfinite(out)))
    assert bool(jnp.allclose(jnp.sum(out, axis=1), 1.0, atol=1e-5))
    assert bool(jnp.allclose(out, ref, atol=1e-5, rtol=1e-5))
    print("KERNEL_OK")
</pallas_src>

<mosaic_0001>
module attributes {stable_mosaic.version = 11 : i64} {
  func.func @_net2_kernel(%arg0: i32, %arg1: memref<8x784xf32, #tpu.memory_space<vmem>>, %arg2: memref<784x128xf32, #tpu.memory_space<vmem>>, %arg3: memref<1x128xf32, #tpu.memory_space<vmem>>, %arg4: memref<128x128xf32, #tpu.memory_space<vmem>>, %arg5: memref<1x128xf32, #tpu.memory_space<vmem>>, %arg6: memref<128x128xf32, #tpu.memory_space<vmem>>, %arg7: memref<1x128xf32, #tpu.memory_space<vmem>>, %arg8: memref<8x128xf32, #tpu.memory_space<vmem>>) attributes {dimension_semantics = [#tpu.dimension_semantics<arbitrary>], iteration_bounds = array<i64: 1>, scalar_prefetch = 0 : i64, scratch_operands = 0 : i64, tpu.core_type = #tpu.core_type<tc>, window_params = [{pipeline_mode = #tpu.pipeline_mode<synchronous>, transform_indices = @transform_0, window_bounds = array<i64: 8, 784>}, {pipeline_mode = #tpu.pipeline_mode<synchronous>, transform_indices = @transform_1, window_bounds = array<i64: 784, 128>}, {pipeline_mode = #tpu.pipeline_mode<synchronous>, transform_indices = @transform_2, window_bounds = array<i64: 1, 128>}, {pipeline_mode = #tpu.pipeline_mode<synchronous>, transform_indices = @transform_3, window_bounds = array<i64: 128, 128>}, {pipeline_mode = #tpu.pipeline_mode<synchronous>, transform_indices = @transform_4, window_bounds = array<i64: 1, 128>}, {pipeline_mode = #tpu.pipeline_mode<synchronous>, transform_indices = @transform_5, window_bounds = array<i64: 128, 128>}, {pipeline_mode = #tpu.pipeline_mode<synchronous>, transform_indices = @transform_6, window_bounds = array<i64: 1, 128>}, {pipeline_mode = #tpu.pipeline_mode<synchronous>, transform_indices = @transform_7, window_bounds = array<i64: 8, 128>}]} {
    %c0 = arith.constant 0 : index
    %c0_0 = arith.constant 0 : index
    %0 = vector.load %arg1[%c0, %c0_0] : memref<8x784xf32, #tpu.memory_space<vmem>>, vector<8x784xf32>
    %c0_1 = arith.constant 0 : index
    %c0_2 = arith.constant 0 : index
    %1 = vector.load %arg2[%c0_1, %c0_2] : memref<784x128xf32, #tpu.memory_space<vmem>>, vector<784x128xf32>
    %cst = arith.constant dense<0.000000e+00> : vector<8x128xf32>
    %2 = tpu.matmul %0, %1, %cst {dimension_numbers = #tpu.dot_dimension_numbers<[1], [0], [0], [1], [0, 0, 1, 1], [], []>} : vector<8x784xf32>, vector<784x128xf32>, vector<8x128xf32> -> vector<8x128xf32>
    %c0_3 = arith.constant 0 : index
    %c0_4 = arith.constant 0 : index
    %3 = vector.load %arg3[%c0_3, %c0_4] : memref<1x128xf32, #tpu.memory_space<vmem>>, vector<1x128xf32>
    %4 = vector.broadcast %3 : vector<1x128xf32> to vector<8x128xf32>
    %5 = arith.addf %2, %4 : vector<8x128xf32>
    %cst_5 = arith.constant 0.000000e+00 : f32
    %6 = vector.broadcast %cst_5 : f32 to vector<8x128xf32>
    %7 = arith.maximumf %5, %6 : vector<8x128xf32>
    %c0_6 = arith.constant 0 : index
    %c0_7 = arith.constant 0 : index
    %8 = vector.load %arg4[%c0_6, %c0_7] : memref<128x128xf32, #tpu.memory_space<vmem>>, vector<128x128xf32>
    %cst_8 = arith.constant dense<0.000000e+00> : vector<8x128xf32>
    %9 = tpu.matmul %7, %8, %cst_8 {dimension_numbers = #tpu.dot_dimension_numbers<[1], [0], [0], [1], [0, 0, 1, 1], [], []>} : vector<8x128xf32>, vector<128x128xf32>, vector<8x128xf32> -> vector<8x128xf32>
    %c0_9 = arith.constant 0 : index
    %c0_10 = arith.constant 0 : index
    %10 = vector.load %arg5[%c0_9, %c0_10] : memref<1x128xf32, #tpu.memory_space<vmem>>, vector<1x128xf32>
    %11 = vector.broadcast %10 : vector<1x128xf32> to vector<8x128xf32>
    %12 = arith.addf %9, %11 : vector<8x128xf32>
    %cst_11 = arith.constant 0.000000e+00 : f32
    %13 = vector.broadcast %cst_11 : f32 to vector<8x128xf32>
    %14 = arith.maximumf %12, %13 : vector<8x128xf32>
    %c0_12 = arith.constant 0 : index
    %c0_13 = arith.constant 0 : index
    %15 = vector.load %arg6[%c0_12, %c0_13] : memref<128x128xf32, #tpu.memory_space<vmem>>, vector<128x128xf32>
    %cst_14 = arith.constant dense<0.000000e+00> : vector<8x128xf32>
    %16 = tpu.matmul %14, %15, %cst_14 {dimension_numbers = #tpu.dot_dimension_numbers<[1], [0], [0], [1], [0, 0, 1, 1], [], []>} : vector<8x128xf32>, vector<128x128xf32>, vector<8x128xf32> -> vector<8x128xf32>
    %c0_15 = arith.constant 0 : index
    %c0_16 = arith.constant 0 : index
    %17 = vector.load %arg7[%c0_15, %c0_16] : memref<1x128xf32, #tpu.memory_space<vmem>>, vector<1x128xf32>
    %18 = vector.broadcast %17 : vector<1x128xf32> to vector<8x128xf32>
    %19 = arith.addf %16, %18 : vector<8x128xf32>
    %20 = tpu.iota {dimensions = array<i32: 1>} : vector<8x128xi32>
    %c10_i32 = arith.constant 10 : i32
    %21 = vector.broadcast %c10_i32 : i32 to vector<8x128xi32>
    %22 = arith.cmpi slt, %20, %21 : vector<8x128xi32>
    %cst_17 = arith.constant -1.000000e+30 : f32
    %23 = vector.broadcast %cst_17 : f32 to vector<8x128xf32>
    %24 = arith.select %22, %19, %23 : vector<8x128xi1>, vector<8x128xf32>
    %cst_18 = arith.constant dense<0xFF800000> : vector<8xf32>
    %25 = vector.multi_reduction <maximumf>, %24, %cst_18 [1] : vector<8x128xf32> to vector<8xf32>
    %26 = vector.shape_cast %25 : vector<8xf32> to vector<8x1xf32>
    %27 = vector.broadcast %26 : vector<8x1xf32> to vector<8x128xf32>
    %28 = arith.subf %24, %27 : vector<8x128xf32>
    %29 = math.exp %28 : vector<8x128xf32>
    %cst_19 = arith.constant dense<0.000000e+00> : vector<8xf32>
    %30 = vector.multi_reduction <add>, %29, %cst_19 [1] : vector<8x128xf32> to vector<8xf32>
    %31 = vector.shape_cast %30 : vector<8xf32> to vector<8x1xf32>
    %32 = vector.broadcast %31 : vector<8x1xf32> to vector<8x128xf32>
    %33 = arith.divf %29, %32 : vector<8x128xf32>
    %c0_20 = arith.constant 0 : index
    %c0_21 = arith.constant 0 : index
    %34 = vector.load %arg8[%c0_20, %c0_21] : memref<8x128xf32, #tpu.memory_space<vmem>>, vector<8x128xf32>
    tpu.vector_store %arg8[%c0_20, %c0_21], %33 {strides = array<i32>} : memref<8x128xf32, #tpu.memory_space<vmem>>, vector<8x128xf32>,
    return
  }
  func.func @transform_0(%arg0: i32) -> (i32, i32) {
    %c0_i32 = arith.constant 0 : i32
    %c0_i32_0 = arith.constant 0 : i32
    %c0_i32_1 = arith.constant 0 : i32
    return %c0_i32, %c0_i32_0 : i32, i32
  }
  func.func @transform_1(%arg0: i32) -> (i32, i32) {
    %c0_i32 = arith.constant 0 : i32
    %c0_i32_0 = arith.constant 0 : i32
    %c0_i32_1 = arith.constant 0 : i32
    return %c0_i32, %c0_i32_0 : i32, i32
  }
  func.func @transform_2(%arg0: i32) -> (i32, i32) {
    %c0_i32 = arith.constant 0 : i32
    %c0_i32_0 = arith.constant 0 : i32
    %c0_i32_1 = arith.constant 0 : i32
    return %c0_i32, %c0_i32_0 : i32, i32
  }
  func.func @transform_3(%arg0: i32) -> (i32, i32) {
    %c0_i32 = arith.constant 0 : i32
    %c0_i32_0 = arith.constant 0 : i32
    %c0_i32_1 = arith.constant 0 : i32
    return %c0_i32, %c0_i32_0 : i32, i32
  }
  func.func @transform_4(%arg0: i32) -> (i32, i32) {
    %c0_i32 = arith.constant 0 : i32
    %c0_i32_0 = arith.constant 0 : i32
    %c0_i32_1 = arith.constant 0 : i32
    return %c0_i32, %c0_i32_0 : i32, i32
  }
  func.func @transform_5(%arg0: i32) -> (i32, i32) {
    %c0_i32 = arith.constant 0 : i32
    %c0_i32_0 = arith.constant 0 : i32
    %c0_i32_1 = arith.constant 0 : i32
    return %c0_i32, %c0_i32_0 : i32, i32
  }
  func.func @transform_6(%arg0: i32) -> (i32, i32) {
    %c0_i32 = arith.constant 0 : i32
    %c0_i32_0 = arith.constant 0 : i32
    %c0_i32_1 = arith.constant 0 : i32
    return %c0_i32, %c0_i32_0 : i32, i32
  }
  func.func @transform_7(%arg0: i32) -> (i32, i32) {
    %c0_i32 = arith.constant 0 : i32
    %c0_i32_0 = arith.constant 0 : i32
    %c0_i32_1 = arith.constant 0 : i32
    return %c0_i32, %c0_i32_0 : i32, i32
  }
}

</mosaic_0001>

<bundles_post_ra>
// kernel: net2_forward.1
= control target key start
LH: loop header
LB: loop body
LE: loop exit
PB: predicated region body
PF: predicated region fallthrough
CT: control target
= control target key end

     0   :  { %12 = vsyncpa [#allocation3], 0  ;;  %s1389_s0 = inlined_call_operand.hbm [shape: f32[8,784], index: 0, kind: input, shape index: {}]   ;;  %s1390_s1 = inlined_call_operand.hbm [shape: f32[784,128], index: 1, kind: input, shape index: {}]   ;;  %s1391_s2 = inlined_call_operand.hbm [shape: f32[1,128], index: 2, kind: input, shape index: {}]   ;;  %s1392_s3 = inlined_call_operand.hbm [shape: f32[128,128], index: 3, kind: input, shape index: {}]   ;;  %s1393_s4 = inlined_call_operand.vmem [shape: f32[1,128], index: 4, kind: input, shape index: {}]   ;;  %s1394_s5 = inlined_call_operand.hbm [shape: f32[128,128], index: 5, kind: input, shape index: {}]   ;;  %s1395_s6 = inlined_call_operand.vmem [shape: f32[1,128], index: 6, kind: input, shape index: {}]   ;;  %s1396_s7 = inlined_call_operand.hbm [shape: f32[8,128], index: 7, kind: output, shape index: {}]  }
   0x1   :  { %13 = vsyncpa [#allocation6], 0 }
   0x2   :  { %14 = vsyncpa [#allocation9], 0 }
   0x3   :  { %15 = vsyncpa [#allocation4], 0  ;;  %s1231_s24 = smov [#allocation5]   ;;  %s1091_s28 = scalar_lea.hbm %s1390_s1, 12544 }
   0x4   :  { %s31_s25 = sshll.u32 %s1231_s24, 4  ;;  %p1092_p0 = scmp.ne.s32.totalorder %s1390_s1, %s1091_s28  ;;  %s32_s25 = int_to_ptr.vmem [resolvable:$true] %s31_s25 }
   0x5   :  { %p1095_p1 = scmp.lt.u32.totalorder %s1091_s28, %s1390_s1 }
   0x7   :  { %p1097_p2 = pnand %p1095_p1, %p1092_p0 }
   0x9   :  { %1100 = shalt.err (!%p1097_p2)
}
   0xa   :  { %s1101_s10 = scalar_lea.vmem %s32_s25, 12544  ;;  %p1106_p4 = scmp.lt.s32.totalorder %s32_s25, %s32_s25 }
   0xb   :  { %p1102_p3 = scmp.ne.s32.totalorder %s32_s25, %s1101_s10  ;;  %p1107_p5 = scmp.lt.s32.totalorder %s1101_s10, %s1101_s10 }
   0xd   :  { %p1108_p6 = por %p1107_p5, %p1106_p4 }
   0xf   :  { %p1109_p7 = pnand %p1108_p6, %p1102_p3 }
  0x11   :  { %1112 = shalt.err (!%p1109_p7)
}
  0x12   :  { %s1232_s11 = smov 128   ;;  %s1233_s12 = smov 8  }
  0x13   :  { %37 = dma.hbm_to_vmem [thread:$0]  %s1390_s1, 12544, %s32_s25, [#allocation6], %s1232_s11, %s1232_s11, %s1233_s12  }
  0x14   :  { %s1234_s15 = smov [#allocation8]   ;;  %s1235_s17 = smov [#allocation2]  }
  0x15   :  { %s53_s16 = sshll.u32 %s1234_s15, 4  ;;  %s22_s18 = sshll.u32 %s1235_s17, 4  ;;  %s54_s16 = int_to_ptr.vmem [resolvable:$true] %s53_s16  ;;  %s23_s18 = int_to_ptr.vmem [resolvable:$true] %s22_s18 }
  0x16   :  { %s1113_s21 = scalar_lea.hbm %s1392_s3, 2048 }
  0x17   :  { %p1114_p8 = scmp.ne.s32.totalorder %s1392_s3, %s1113_s21  ;;  %p1117_p9 = scmp.lt.u32.totalorder %s1113_s21, %s1392_s3 }
  0x19   :  { %p1119_p10 = pnand %p1117_p9, %p1114_p8 }
  0x1b   :  { %1122 = shalt.err (!%p1119_p10)
}
  0x1c   :  { %s1123_s1 = scalar_lea.vmem %s54_s16, 2048  ;;  %p1128_p12 = scmp.lt.s32.totalorder %s54_s16, %s54_s16 }
  0x1d   :  { %p1124_p11 = scmp.ne.s32.totalorder %s54_s16, %s1123_s1  ;;  %p1129_p13 = scmp.lt.s32.totalorder %s1123_s1, %s1123_s1 }
  0x1f   :  { %p1130_p0 = por %p1129_p13, %p1128_p12 }
  0x21   :  { %p1131_p1 = pnand %p1130_p0, %p1124_p11 }
  0x23   :  { %1134 = shalt.err (!%p1131_p1)
}
  0x24   :  { %59 = dma.hbm_to_vmem [thread:$0]  %s1392_s3, 2048, %s54_s16, [#allocation9], %s1232_s11, %s1232_s11, %s1233_s12  }
  0x25   :  { %s1135_s30 = scalar_lea.hbm %s1389_s0, 896 }
  0x26   :  { %p1136_p2 = scmp.ne.s32.totalorder %s1389_s0, %s1135_s30  ;;  %p1139_p3 = scmp.lt.u32.totalorder %s1135_s30, %s1389_s0 }
  0x28   :  { %p1141_p4 = pnand %p1139_p3, %p1136_p2 }
  0x2a   :  { %1144 = shalt.err (!%p1141_p4)
}
  0x2b   :  { %s1145_s14 = scalar_lea.vmem %s23_s18, 896  ;;  %p1150_p6 = scmp.lt.s32.totalorder %s23_s18, %s23_s18 }
  0x2c   :  { %p1146_p5 = scmp.ne.s32.totalorder %s23_s18, %s1145_s14  ;;  %p1151_p7 = scmp.lt.s32.totalorder %s1145_s14, %s1145_s14 }
  0x2e   :  { %p1152_p8 = por %p1151_p7, %p1150_p6 }
  0x30   :  { %p1153_p9 = pnand %p1152_p8, %p1146_p5 }
  0x32   :  { %1156 = shalt.err (!%p1153_p9)
}
  0x33   :  { %25 = dma.hbm_to_vmem [thread:$0]  %s1389_s0, 896, %s23_s18, [#allocation3]  }
  0x34   :  { %s1236_s16 = smov [#allocation7]   ;;  %s1237_s19 = smov [#allocation10]  }
  0x35   :  { %s44_s17 = sshll.u32 %s1236_s16, 4  ;;  %s67_s20 = sshll.u32 %s1237_s19, 4  ;;  %s45_s17 = int_to_ptr.vmem [resolvable:$true] %s44_s17  ;;  %s68_s20 = int_to_ptr.vmem [resolvable:$true] %s67_s20 }
  0x36   :  { %s1157_s23 = scalar_lea.hbm %s1391_s2, 16 }
  0x37   :  { %p1158_p10 = scmp.ne.s32.totalorder %s1391_s2, %s1157_s23  ;;  %p1161_p11 = scmp.lt.u32.totalorder %s1157_s23, %s1391_s2 }
  0x39   :  { %p1163_p12 = pnand %p1161_p11, %p1158_p10 }
  0x3b   :  { %1166 = shalt.err (!%p1163_p12)
}
  0x3c   :  { %s1167_s0 = scalar_lea.vmem %s45_s17, 16  ;;  %s1171_s18 = scalar_lea.vmem %s45_s17, 32 }
  0x3d   :  { %p1168_p13 = scmp.ne.s32.totalorder %s45_s17, %s1167_s0  ;;  %p1172_p0 = scmp.lt.s32.totalorder %s45_s17, %s45_s17 }
  0x3e   :  { %p1173_p1 = scmp.lt.s32.totalorder %s1171_s18, %s1167_s0 }
  0x40   :  { %p1174_p2 = por %p1173_p1, %p1172_p0 }
  0x42   :  { %p1175_p3 = pnand %p1174_p2, %p1168_p13 }
  0x44   :  { %1178 = shalt.err (!%p1175_p3)
}
  0x45   :  { %47 = dma.hbm_to_vmem [thread:$0]  %s1391_s2, 16, %s45_s17, [#allocation6]  }
  0x46   :  { %s1179_s8 = scalar_lea.hbm %s1394_s5, 2048 }
  0x47   :  { %p1180_p4 = scmp.ne.s32.totalorder %s1394_s5, %s1179_s8  ;;  %p1183_p5 = scmp.lt.u32.totalorder %s1179_s8, %s1394_s5 }
  0x49   :  { %p1185_p6 = pnand %p1183_p5, %p1180_p4 }
  0x4b   :  { %1188 = shalt.err (!%p1185_p6)
}
  0x4c   :  { %s1189_s3 = scalar_lea.vmem %s68_s20, 2048  ;;  %p1194_p8 = scmp.lt.s32.totalorder %s68_s20, %s68_s20 }
  0x4d   :  { %p1190_p7 = scmp.ne.s32.totalorder %s68_s20, %s1189_s3  ;;  %p1195_p9 = scmp.lt.s32.totalorder %s1189_s3, %s1189_s3 }
  0x4f   :  { %p1196_p10 = por %p1195_p9, %p1194_p8 }
  0x51   :  { %p1197_p11 = pnand %p1196_p10, %p1190_p7 }
  0x53   :  { %1200 = shalt.err (!%p1197_p11)
}
  0x54   :  { %73 = dma.hbm_to_vmem [thread:$0]  %s1394_s5, 2048, %s68_s20, [#allocation9], %s1232_s11, %s1232_s11, %s1233_s12  }
  0x55   :  { %1223 = dma.done.wait [#allocation3], 896  }
  0x56   :  { %1224 = vsyncadd [#allocation3], 4294966400 }
  0x57   :  { %1225 = dma.done.wait [#allocation6], 12560  }
  0x58   :  { %1226 = vsyncadd [#allocation6], 4294954736 }
  0x59   :  { %1227 = dma.done.wait [#allocation9], 4096  }
  0x5a   :  { %1228 = vsyncadd [#allocation9], 4294963200  ;;  %v114_v0 = vld [vmem:[#allocation5 + $0x80] sm:$0xff]  ;;  %v115_v1 = vld [vmem:[#allocation5 + $0x88] sm:$0xff]  ;;  %vm1239_vm0 = vmmov 0   ;;  %vm203_vm1 = vcmask 130048  }
  0x5b   :  { %v98_v2 = vld [vmem:[#allocation5] sm:$0xff]  ;;  %v929_v3 = vpack.c.bf16 %v115_v1, %v114_v0  ;;  %v99_v4 = vld [vmem:[#allocation5 + $0x8] sm:$0xff]  ;;  %v116_v11 = vld [vmem:[#allocation5 + $0x90] sm:$0xff] }
  0x5c   :  { %v146_v5 = vld [vmem:[#allocation5 + $0x180] sm:$0xff]  ;;  %v147_v6 = vld [vmem:[#allocation5 + $0x188] sm:$0xff]  ;;  %v931_v7 = vpack.c.bf16 %v99_v4, %v98_v2  ;;  %v117_v13 = vld [vmem:[#allocation5 + $0x98] sm:$0xff] }
  0x5d   :  { %v961_v8 = vpack.c.bf16 %v147_v6, %v146_v5  ;;  %v130_v9 = vld [vmem:[#allocation5 + $0x100] sm:$0xff]  ;;  %v131_v10 = vld [vmem:[#allocation5 + $0x108] sm:$0xff]  ;;  %930 = vmatprep.subr.bf16.mxu0 %v929_v3  ;;  %v100_v14 = vld [vmem:[#allocation5 + $0x10] sm:$0xff]  ;;  %v933_v16 = vpack.c.bf16 %v117_v13, %v116_v11 }
  0x5e   :  { %v963_v12 = vpack.c.bf16 %v131_v10, %v130_v9  ;;  %v101_v15 = vld [vmem:[#allocation5 + $0x18] sm:$0xff]  ;;  %932 = vmatpush3.bf16.msra.mxu0 %v931_v7  ;;  %v148_v18 = vld [vmem:[#allocation5 + $0x190] sm:$0xff]  ;;  %v118_v23 = vld [vmem:[#allocation5 + $0xa0] sm:$0xff] }
  0x5f   :  { %962 = vmatprep.subr.bf16.mxu1 %v961_v8  ;;  %v935_v17 = vpack.c.bf16 %v101_v15, %v100_v14  ;;  %v149_v19 = vld [vmem:[#allocation5 + $0x198] sm:$0xff]  ;;  %v132_v20 = vld [vmem:[#allocation5 + $0x110] sm:$0xff]  ;;  %v119_v24 = vld [vmem:[#allocation5 + $0xa8] sm:$0xff]  ;;  %934 = vmatprep.subr.bf16.mxu0 %v933_v16 }
  0x60   :  { %964 = vmatpush3.bf16.msra.mxu1 %v963_v12  ;;  %v965_v21 = vpack.c.bf16 %v149_v19, %v148_v18  ;;  %v133_v22 = vld [vmem:[#allocation5 + $0x118] sm:$0xff]  ;;  %v937_v26 = vpack.c.bf16 %v119_v24, %v118_v23  ;;  %v102_v27 = vld [vmem:[#allocation5 + $0x20] sm:$0xff]  ;;  %v103_v28 = vld [vmem:[#allocation5 + $0x28] sm:$0xff] }
  0x61   :  { %v967_v25 = vpack.c.bf16 %v133_v22, %v132_v20  ;;  %v150_v29 = vld [vmem:[#allocation5 + $0x1a0] sm:$0xff]  ;;  %v151_v30 = vld [vmem:[#allocation5 + $0x1a8] sm:$0xff]  ;;  %v939_v33 = vpack.c.bf16 %v103_v28, %v102_v27  ;;  %v120_v35 = vld [vmem:[#allocation5 + $0xb0] sm:$0xff] }
  0x62   :  { %966 = vmatprep.subr.bf16.mxu1 %v965_v21  ;;  %v134_v31 = vld [vmem:[#allocation5 + $0x120] sm:$0xff]  ;;  %v135_v32 = vld [vmem:[#allocation5 + $0x128] sm:$0xff]  ;;  %936 = vmatpush3.bf16.msra.mxu0 %v935_v17  ;;  %v969_v34 = vpack.c.bf16 %v151_v30, %v150_v29  ;;  %v121_v36 = vld [vmem:[#allocation5 + $0xb8] sm:$0xff] }
  0x63   :  { %v104_v37 = vld [vmem:[#allocation5 + $0x30] sm:$0xff]  ;;  %938 = vmatprep.subr.bf16.mxu0 %v937_v26  ;;  %v971_v38 = vpack.c.bf16 %v135_v32, %v134_v31  ;;  %v941_v39 = vpack.c.bf16 %v121_v36, %v120_v35  ;;  %v105_v40 = vld [vmem:[#allocation5 + $0x38] sm:$0xff]  ;;  %v122_v46 = vld [vmem:[#allocation5 + $0xc0] sm:$0xff] }
  0x64   :  { %968 = vmatpush3.bf16.msra.mxu1 %v967_v25  ;;  %v152_v41 = vld [vmem:[#allocation5 + $0x1b0] sm:$0xff]  ;;  %v153_v42 = vld [vmem:[#allocation5 + $0x1b8] sm:$0xff]  ;;  %v123_v47 = vld [vmem:[#allocation5 + $0xc8] sm:$0xff]  ;;  %v943_v48 = vpack.c.bf16 %v105_v40, %v104_v37 }
  0x65   :  { %970 = vmatprep.subr.bf16.mxu1 %v969_v34  ;;  %v973_v43 = vpack.c.bf16 %v153_v42, %v152_v41  ;;  %v136_v44 = vld [vmem:[#allocation5 + $0x130] sm:$0xff]  ;;  %v137_v45 = vld [vmem:[#allocation5 + $0x138] sm:$0xff]  ;;  %v154_v49 = vld [vmem:[#allocation5 + $0x1c0] sm:$0xff]  ;;  %v945_v52 = vpack.c.bf16 %v123_v47, %v122_v46 }
  0x66   :  { %940 = vmatpush3.bf16.msra.mxu0 %v939_v33  ;;  %v155_v50 = vld [vmem:[#allocation5 + $0x1c8] sm:$0xff]  ;;  %v975_v51 = vpack.c.bf16 %v137_v45, %v136_v44  ;;  %v106_v53 = vld [vmem:[#allocation5 + $0x40] sm:$0xff]  ;;  %v124_v58 = vld [vmem:[#allocation5 + $0xd0] sm:$0xff] }
  0x67   :  { %942 = vmatprep.subr.bf16.mxu0 %v941_v39  ;;  %v107_v54 = vld [vmem:[#allocation5 + $0x48] sm:$0xff]  ;;  %v138_v55 = vld [vmem:[#allocation5 + $0x140] sm:$0xff]  ;;  %v977_v56 = vpack.c.bf16 %v155_v50, %v154_v49  ;;  %v125_v59 = vld [vmem:[#allocation5 + $0xd8] sm:$0xff]  ;;  %v1238_v50 = vmov 0.0|0.0  }
  0x68   :  { %972 = vmatpush3.bf16.msra.mxu1 %v971_v38  ;;  %v139_v57 = vld [vmem:[#allocation5 + $0x148] sm:$0xff]  ;;  %v156_v60 = vld [vmem:[#allocation5 + $0x1d0] sm:$0xff]  ;;  %v157_v61 = vld [vmem:[#allocation5 + $0x1d8] sm:$0xff]  ;;  %v947_v62 = vpack.c.bf16 %v107_v54, %v106_v53  ;;  %v949_v0 = vpack.c.bf16 %v125_v59, %v124_v58 }
  0x69   :  { %974 = vmatprep.subr.bf16.mxu1 %v973_v43  ;;  %v979_v63 = vpack.c.bf16 %v139_v57, %v138_v55  ;;  %v108_v1 = vld [vmem:[#allocation5 + $0x50] sm:$0xff]  ;;  %v109_v2 = vld [vmem:[#allocation5 + $0x58] sm:$0xff]  ;;  %v981_v4 = vpack.c.bf16 %v157_v61, %v156_v60  ;;  %v126_v6 = vld [vmem:[#allocation5 + $0xe0] sm:$0xff]  ;;  %v1240_v60 = vmov 0.0  }
  0x6a   :  { %944 = vmatpush3.bf16.msra.mxu0 %v943_v48  ;;  %v140_v3 = vld [vmem:[#allocation5 + $0x150] sm:$0xff]  ;;  %v141_v5 = vld [vmem:[#allocation5 + $0x158] sm:$0xff]  ;;  %v127_v7 = vld [vmem:[#allocation5 + $0xe8] sm:$0xff]  ;;  %v951_v10 = vpack.c.bf16 %v109_v2, %v108_v1 }
  0x6b   :  { %946 = vmatprep.subr.bf16.mxu0 %v945_v52  ;;  %v158_v8 = vld [vmem:[#allocation5 + $0x1e0] sm:$0xff]  ;;  %v159_v9 = vld [vmem:[#allocation5 + $0x1e8] sm:$0xff]  ;;  %v92_v12 = vld [vmem:[#allocation2 + $0x8] sm:$0xff]  ;;  %v983_v13 = vpack.c.bf16 %v141_v5, %v140_v3  ;;  %v953_v14 = vpack.c.bf16 %v127_v7, %v126_v6 }
  0x6c   :  { %976 = vmatpush3.bf16.msra.mxu1 %v975_v51  ;;  %v110_v11 = vld [vmem:[#allocation5 + $0x60] sm:$0xff]  ;;  %v111_v15 = vld [vmem:[#allocation5 + $0x68] sm:$0xff]  ;;  %v985_v18 = vpack.c.bf16 %v159_v9, %v158_v8  ;;  %v128_v19 = vld [vmem:[#allocation5 + $0xf0] sm:$0xff]  ;;  %271 = vmatprep.mubr.f32.mxu0 %v92_v12 }
  0x6d   :  { %978 = vmatprep.subr.bf16.mxu1 %v977_v56  ;;  %v142_v16 = vld [vmem:[#allocation5 + $0x160] sm:$0xff]  ;;  %v143_v17 = vld [vmem:[#allocation5 + $0x168] sm:$0xff]  ;;  %v129_v20 = vld [vmem:[#allocation5 + $0xf8] sm:$0xff]  ;;  %v955_v24 = vpack.c.bf16 %v111_v15, %v110_v11 }
  0x6e   :  { %948 = vmatpush3.bf16.msra.mxu0 %v947_v62  ;;  %v94_v21 = vld [vmem:[#allocation2 + $0x18] sm:$0xff]  ;;  %v160_v22 = vld [vmem:[#allocation5 + $0x1f0] sm:$0xff]  ;;  %v161_v23 = vld [vmem:[#allocation5 + $0x1f8] sm:$0xff]  ;;  %v987_v25 = vpack.c.bf16 %v143_v17, %v142_v16  ;;  %v957_v26 = vpack.c.bf16 %v129_v20, %v128_v19 }
  0x6f   :  { %950 = vmatprep.subr.bf16.mxu0 %v949_v0  ;;  %341 = vmatprep.mubr.f32.mxu1 %v94_v21  ;;  %v112_v27 = vld [vmem:[#allocation5 + $0x70] sm:$0xff]  ;;  %v113_v28 = vld [vmem:[#allocation5 + $0x78] sm:$0xff]  ;;  %v989_v30 = vpack.c.bf16 %v161_v23, %v160_v22  ;;  %v178_v32 = vld [vmem:[#allocation5 + $0x280] sm:$0xff] }
  0x70   :  { %980 = vmatpush3.bf16.msra.mxu1 %v979_v63  ;;  %v144_v29 = vld [vmem:[#allocation5 + $0x170] sm:$0xff]  ;;  %v145_v31 = vld [vmem:[#allocation5 + $0x178] sm:$0xff]  ;;  %v179_v33 = vld [vmem:[#allocation5 + $0x288] sm:$0xff]  ;;  %v959_v34 = vpack.c.bf16 %v113_v28, %v112_v27 }
  0x71   :  { %982 = vmatprep.subr.bf16.mxu1 %v981_v4  ;;  %v991_v35 = vpack.c.bf16 %v145_v31, %v144_v29  ;;  %v993_v36 = vpack.c.bf16 %v179_v33, %v178_v32  ;;  %v162_v37 = vld [vmem:[#allocation5 + $0x200] sm:$0xff]  ;;  %v163_v38 = vld [vmem:[#allocation5 + $0x208] sm:$0xff]  ;;  %v180_v39 = vld [vmem:[#allocation5 + $0x290] sm:$0xff] }
  0x72   :  { %952 = vmatpush3.bf16.msra.mxu0 %v951_v10  ;;  %v181_v40 = vld [vmem:[#allocation5 + $0x298] sm:$0xff]  ;;  %v91_v41 = vld [vmem:[#allocation2] sm:$0xff]  ;;  %v995_v42 = vpack.c.bf16 %v163_v38, %v162_v37  ;;  %v164_v44 = vld [vmem:[#allocation5 + $0x210] sm:$0xff] }
  0x73   :  { %954 = vmatprep.subr.bf16.mxu0 %v953_v14  ;;  %v93_v43 = vld [vmem:[#allocation2 + $0x10] sm:$0xff]  ;;  %v997_v45 = vpack.c.bf16 %v181_v40, %v180_v39  ;;  %v182_v47 = vld [vmem:[#allocation5 + $0x2a0] sm:$0xff]  ;;  %v183_v48 = vld [vmem:[#allocation5 + $0x2a8] sm:$0xff] }
  0x74   :  { %984 = vmatpush3.bf16.msra.mxu1 %v983_v13  ;;  %v165_v46 = vld [vmem:[#allocation5 + $0x218] sm:$0xff]  ;;  %v96_v49 = vld [vmem:[#allocation2 + $0x28] sm:$0xff]  ;;  %v194_v51 = vld [vmem:[#allocation5 + $0x300] sm:$0xff]  ;;  %v1001_v55 = vpack.c.bf16 %v183_v48, %v182_v47 }
  0x75   :  { %986 = vmatprep.subr.bf16.mxu1 %v985_v18  ;;  %v195_v52 = vld [vmem:[#allocation5 + $0x308] sm:$0xff]  ;;  %v999_v54 = vpack.c.bf16 %v165_v46, %v164_v44  ;;  %v166_v56 = vld [vmem:[#allocation5 + $0x220] sm:$0xff]  ;;  %v184_v58 = vld [vmem:[#allocation5 + $0x2b0] sm:$0xff] }
  0x76   :  { %956 = vmatpush3.bf16.msra.mxu0 %v955_v24  ;;  %v1026_v53 = vpack.c.bf16 %v195_v52, %v194_v51  ;;  %v167_v57 = vld [vmem:[#allocation5 + $0x228] sm:$0xff]  ;;  %v185_v59 = vld [vmem:[#allocation5 + $0x2b8] sm:$0xff]  ;;  %v168_v0 = vld [vmem:[#allocation5 + $0x230] sm:$0xff] }
  0x77   :  { %958 = vmatprep.subr.bf16.mxu0 %v957_v26  ;;  %v97_v61 = vld [vmem:[#allocation2 + $0x30] sm:$0xff]  ;;  %v1003_v62 = vpack.c.bf16 %v167_v57, %v166_v56  ;;  %v1005_v63 = vpack.c.bf16 %v185_v59, %v184_v58  ;;  %v186_v2 = vld [vmem:[#allocation5 + $0x2c0] sm:$0xff]  ;;  %v187_v3 = vld [vmem:[#allocation5 + $0x2c8] sm:$0xff] }
  0x78   :  { %988 = vmatpush3.bf16.msra.mxu1 %v987_v25  ;;  %v169_v1 = vld [vmem:[#allocation5 + $0x238] sm:$0xff]  ;;  %v1009_v5 = vpack.c.bf16 %v187_v3, %v186_v2  ;;  %v170_v6 = vld [vmem:[#allocation5 + $0x240] sm:$0xff]  ;;  %v171_v7 = vld [vmem:[#allocation5 + $0x248] sm:$0xff] }
  0x79   :  { %990 = vmatprep.subr.bf16.mxu1 %v989_v30  ;;  %v1007_v4 = vpack.c.bf16 %v169_v1, %v168_v0  ;;  %v188_v8 = vld [vmem:[#allocation5 + $0x2d0] sm:$0xff]  ;;  %v189_v9 = vld [vmem:[#allocation5 + $0x2d8] sm:$0xff]  ;;  %v1011_v10 = vpack.c.bf16 %v171_v7, %v170_v6  ;;  %v190_v14 = vld [vmem:[#allocation5 + $0x2e0] sm:$0xff] }
  0x7a   :  { %960 = vmatpush3.bf16.msra.mxu0 %v959_v34  ;;  %v1013_v11 = vpack.c.bf16 %v189_v9, %v188_v8  ;;  %v172_v12 = vld [vmem:[#allocation5 + $0x250] sm:$0xff]  ;;  %v173_v13 = vld [vmem:[#allocation5 + $0x258] sm:$0xff]  ;;  %v191_v15 = vld [vmem:[#allocation5 + $0x2e8] sm:$0xff] }
  0x7b   :  { %994 = vmatprep.subr.bf16.mxu0 %v993_v36  ;;  %v1015_v16 = vpack.c.bf16 %v173_v13, %v172_v12  ;;  %v1017_v17 = vpack.c.bf16 %v191_v15, %v190_v14  ;;  %v174_v18 = vld [vmem:[#allocation5 + $0x260] sm:$0xff]  ;;  %v175_v19 = vld [vmem:[#allocation5 + $0x268] sm:$0xff]  ;;  %v192_v20 = vld [vmem:[#allocation5 + $0x2f0] sm:$0xff] }
  0x7c   :  { %992 = vmatpush3.bf16.msra.mxu1 %v991_v35  ;;  %v193_v21 = vld [vmem:[#allocation5 + $0x2f8] sm:$0xff]  ;;  %v1019_v22 = vpack.c.bf16 %v175_v19, %v174_v18  ;;  %v176_v24 = vld [vmem:[#allocation5 + $0x270] sm:$0xff]  ;;  %v95_v27 = vld [vmem:[#allocation2 + $0x20] sm:$0xff] }
  0x7d   :  { %1025 = vmatprep.subr.bf16.mxu1 %v1238_v50  ;;  %272 = vmatmul.mubr.f32.vlgmr.msra.gmra.mrb[0].mxu0 %v91_v41  ;;  %v1021_v23 = vpack.c.bf16 %v193_v21, %v192_v20  ;;  %v177_v25 = vld [vmem:[#allocation5 + $0x278] sm:$0xff]  ;;  %v490_v30 = vld [vmem:[#allocation8 + $0x10] sm:$0xff]  ;;  %v491_v32 = vld [vmem:[#allocation8 + $0x18] sm:$0xff] }
  0x7e   :  { %996 = vmatpush3.bf16.msra.mxu0 %v995_v42  ;;  %411 = vmatprep.mubr.f32.mxu0 %v96_v49  ;;  %v1023_v26 = vpack.c.bf16 %v177_v25, %v176_v24  ;;  %v488_v28 = vld [vmem:[#allocation8] sm:$0xff]  ;;  %v489_v29 = vld [vmem:[#allocation8 + $0x8] sm:$0xff]  ;;  %v1032_v33 = vpack.c.bf16 %v491_v32, %v490_v30  ;;  %v494_v37 = vld [vmem:[#allocation8 + $0x30] sm:$0xff] }
  0x7f   :  { %342 = vmatmul.mubr.f32.vlgmr.msra.gmra.mrb[0].mxu1 %v93_v43  ;;  %998 = vmatprep.subr.bf16.mxu0 %v997_v45  ;;  %v1029_v31 = vpack.c.bf16 %v489_v29, %v488_v28  ;;  %v492_v34 = vld [vmem:[#allocation8 + $0x20] sm:$0xff]  ;;  %v493_v35 = vld [vmem:[#allocation8 + $0x28] sm:$0xff]  ;;  %v495_v38 = vld [vmem:[#allocation8 + $0x38] sm:$0xff] }
  0x80   :  { %1027 = vmatpush3.bf16.msra.mxu1 %v1026_v53  ;;  %856 = vmatprep.mubr.msk.f32.mxu1 %vm1239_vm0, %v1240_v60  ;;  %v1035_v36 = vpack.c.bf16 %v493_v35, %v492_v34  ;;  %v1038_v39 = vpack.c.bf16 %v495_v38, %v494_v37  ;;  %v496_v40 = vld [vmem:[#allocation8 + $0x40] sm:$0xff]  ;;  %v497_v41 = vld [vmem:[#allocation8 + $0x48] sm:$0xff]  ;;  %v498_v43 = vld [vmem:[#allocation8 + $0x50] sm:$0xff]  ;;  %v675_v34 = vlaneseq }
  0x81   :  { %1028 = vmatprep.subr.bf16.mxu1 %v1238_v50  ;;  %v1041_v42 = vpack.c.bf16 %v497_v41, %v496_v40  ;;  %v499_v44 = vld [vmem:[#allocation8 + $0x58] sm:$0xff]  ;;  %v500_v46 = vld [vmem:[#allocation8 + $0x60] sm:$0xff]  ;;  %v501_v47 = vld [vmem:[#allocation8 + $0x68] sm:$0xff] }
  0x82   :  { %1000 = vmatpush3.bf16.msra.mxu0 %v999_v54  ;;  %v1044_v45 = vpack.c.bf16 %v499_v44, %v498_v43  ;;  %v1047_v48 = vpack.c.bf16 %v501_v47, %v500_v46  ;;  %v502_v49 = vld [vmem:[#allocation8 + $0x70] sm:$0xff]  ;;  %v503_v51 = vld [vmem:[#allocation8 + $0x78] sm:$0xff]  ;;  %v582_v53 = vld [vmem:[#allocation10] sm:$0xff]  ;;  %v676_v35 = vand.u32 127, %v675_v34 }
  0x83   :  { %1002 = vmatprep.subr.bf16.mxu0 %v1001_v55  ;;  %857 = vmatmul.mubr.msk.f32.vlgmr.msra.gmra.mrb[2].mxu1 %vm203_vm1, %v97_v61  ;;  %v1050_v52 = vpack.c.bf16 %v503_v51, %v502_v49  ;;  %v583_v54 = vld [vmem:[#allocation10 + $0x8] sm:$0xff]  ;;  %v584_v55 = vld [vmem:[#allocation10 + $0x10] sm:$0xff]  ;;  %v585_v57 = vld [vmem:[#allocation10 + $0x18] sm:$0xff] }
  0x84   :  { %891 = vmatprep.mubr.msk.f32.mxu1 %vm1239_vm0, %v1240_v60  ;;  %1030 = vmatpush3.bf16.msra.mxu1 %v1029_v31  ;;  %v1053_v56 = vpack.c.bf16 %v583_v54, %v582_v53  ;;  %v1056_v58 = vpack.c.bf16 %v585_v57, %v584_v55  ;;  %v586_v59 = vld [vmem:[#allocation10 + $0x20] sm:$0xff]  ;;  %v591_v2 = vld [vmem:[#allocation10 + $0x48] sm:$0xff]  ;;  %v708_v29 = vld [vmem:[%s1393_s4] ss:$0 sm:$0xff]  ;;  %vm677_vm2 = vcmp.lt.s32.totalorder %v676_v35, 10  ;;  %s1241_s4 = smov [#allocation11]  }
  0x85   :  { %1031 = vmatprep.subr.bf16.mxu1 %v1238_v50  ;;  %v590_v1 = vld [vmem:[#allocation10 + $0x40] sm:$0xff]  ;;  %v595_v8 = vld [vmem:[#allocation10 + $0x68] sm:$0xff]  ;;  %s695_s17 = sshll.u32 %s1241_s4, 4  ;;  %s696_s17 = int_to_ptr.vmem [resolvable:$true] %s695_s17 }
  0x86   :  { %1004 = vmatpush3.bf16.msra.mxu0 %v1003_v62  ;;  %v588_v62 = vld [vmem:[#allocation10 + $0x30] sm:$0xff]  ;;  %v1065_v3 = vpack.c.bf16 %v591_v2, %v590_v1  ;;  %v594_v7 = vld [vmem:[#allocation10 + $0x60] sm:$0xff]  ;;  %p1206_p13 = scmp.lt.s32.totalorder %s696_s17, %s696_s17 }
  0x87   :  { %1006 = vmatprep.subr.bf16.mxu0 %v1005_v63  ;;  %v589_v63 = vld [vmem:[#allocation10 + $0x38] sm:$0xff]  ;;  %v1071_v9 = vpack.c.bf16 %v595_v8, %v594_v7 }
  0x88   :  { %1033 = vmatpush3.bf16.msra.mxu1 %v1032_v33  ;;  %v1062_v0 = vpack.c.bf16 %v589_v63, %v588_v62 }
  0x89   :  { %1034 = vmatprep.subr.bf16.mxu1 %v1238_v50 }
  0x8a   :  { %1008 = vmatpush3.bf16.msra.mxu0 %v1007_v4  ;;  %v592_v4 = vld [vmem:[#allocation10 + $0x50] sm:$0xff] }
  0x8b   :  { %1010 = vmatprep.subr.bf16.mxu0 %v1009_v5  ;;  %v593_v5 = vld [vmem:[#allocation10 + $0x58] sm:$0xff] }
  0x8c   :  { %1036 = vmatpush3.bf16.msra.mxu1 %v1035_v36  ;;  %v1068_v6 = vpack.c.bf16 %v593_v5, %v592_v4  ;;  %v709_v36 = vld [vmem:[%s1395_s6] ss:$0 sm:$0xff]  ;;  %s1201_s6 = scalar_lea.vmem %s696_s17, 128 }
  0x8d   :  { %1037 = vmatprep.subr.bf16.mxu1 %v1238_v50  ;;  %p1202_p12 = scmp.ne.s32.totalorder %s696_s17, %s1201_s6  ;;  %p1207_p0 = scmp.lt.s32.totalorder %s1201_s6, %s1201_s6 }
  0x8e   :  { %1012 = vmatpush3.bf16.msra.mxu0 %v1011_v10 }
  0x8f   :  { %1014 = vmatprep.subr.bf16.mxu0 %v1013_v11  ;;  %v706_v11 = vld [vmem:[#allocation7] ss:$0 sm:$0xff]  ;;  %p1208_p1 = por %p1207_p0, %p1206_p13 }
  0x90   :  { %1039 = vmatpush3.bf16.msra.mxu1 %v1038_v39 }
  0x91   :  { %1040 = vmatprep.subr.bf16.mxu1 %v1238_v50  ;;  %p1209_p2 = pnand %p1208_p1, %p1202_p12 }
  0x92   :  { %1016 = vmatpush3.bf16.msra.mxu0 %v1015_v16 }
  0x93   :  { %1018 = vmatprep.subr.bf16.mxu0 %v1017_v17 }
  0x94   :  { %1042 = vmatpush3.bf16.msra.mxu1 %v1041_v42 }
  0x95   :  { %1043 = vmatprep.subr.bf16.mxu1 %v1238_v50 }
  0x96   :  { %1020 = vmatpush3.bf16.msra.mxu0 %v1019_v22 }
  0x97   :  { %1022 = vmatprep.subr.bf16.mxu0 %v1021_v23 }
  0x98   :  { %1045 = vmatpush3.bf16.msra.mxu1 %v1044_v45 }
  0x99   :  { %1046 = vmatprep.subr.bf16.mxu1 %v1238_v50 }
  0x9a   :  { %1024 = vmatpush3.bf16.msra.mxu0 %v1023_v26 }
  0x9b   :  { %1052 = vmatprep.subr.bf16.mxu0 %v1238_v50 }
  0x9c   :  { %1048 = vmatpush3.bf16.msra.mxu1 %v1047_v48 }
  0x9d   :  { %412 = vmatmul.mubr.f32.vlgmr.msra.gmra.mrb[2].mxu0 %v95_v27  ;;  %1049 = vmatprep.subr.bf16.mxu1 %v1238_v50  ;;  %v596_v27 = vld [vmem:[#allocation10 + $0x70] sm:$0xff] }
  0x9e   :  { %926 = vmatprep.mubr.msk.f32.mxu0 %vm1239_vm0, %v1240_v60  ;;  %1054 = vmatpush3.bf16.msra.mxu0 %v1053_v56  ;;  %v587_v60 = vld [vmem:[#allocation10 + $0x28] sm:$0xff] }
  0x9f   :  { %1055 = vmatprep.subr.bf16.mxu0 %v1238_v50  ;;  %v1059_v61 = vpack.c.bf16 %v587_v60, %v586_v59 }
  0xa0   :  { %1051 = vmatpush3.bf16.msra.mxu1 %v1050_v52 }
  0xa2   :  { %1057 = vmatpush3.bf16.msra.mxu0 %v1056_v58 }
  0xa3   :  { %1058 = vmatprep.subr.bf16.mxu0 %v1238_v50 }
  0xa6   :  { %1060 = vmatpush3.bf16.msra.mxu0 %v1059_v61 }
  0xa7   :  { %1061 = vmatprep.subr.bf16.mxu0 %v1238_v50 }
  0xaa   :  { %1063 = vmatpush3.bf16.msra.mxu0 %v1062_v0 }
  0xab   :  { %1064 = vmatprep.subr.bf16.mxu0 %v1238_v50 }
  0xae   :  { %1066 = vmatpush3.bf16.msra.mxu0 %v1065_v3 }
  0xaf   :  { %1067 = vmatprep.subr.bf16.mxu0 %v1238_v50 }
  0xb2   :  { %1069 = vmatpush3.bf16.msra.mxu0 %v1068_v6 }
  0xb3   :  { %1070 = vmatprep.subr.bf16.mxu0 %v1238_v50 }
  0xb6   :  { %1072 = vmatpush3.bf16.msra.mxu0 %v1071_v9 }
  0xb7   :  { %1073 = vmatprep.subr.bf16.mxu0 %v1238_v50  ;;  %v597_v50 = vld [vmem:[#allocation10 + $0x78] sm:$0xff] }
  0xb8   :  { %v1074_v28 = vpack.c.bf16 %v597_v50, %v596_v27 }
  0xba   :  { %1075 = vmatpush3.bf16.msra.mxu0 %v1074_v28 }
 0x150   :  { %v742_v10 = vpop.f32.mrb[0].mxu0 }
 0x151   :  { %v743_v12 = vpop.f32.mrb[1].mxu0 }
 0x152   :  { %v777_v13 = vpop.f32.mrb[0].mxu1  ;;  %v744_v14 = vadd.f32 %v743_v12, %v742_v10 }
 0x153   :  { %v778_v15 = vpop.f32.mrb[1].mxu1 }
 0x154   :  { %v779_v16 = vadd.f32 %v778_v15, %v777_v13  ;;  %v274_v17 = vadd.f32 %v744_v14, %v706_v11 }
 0x156   :  { %v344_v18 = vadd.f32 %v779_v16, %v274_v17  ;;  %v483_v19 = vpop.f32.mrb[2].mxu1 }
 0x157   :  { %v858_v20 = vpop.f32.mrb[3].mxu1 }
 0x170   :  { %v812_v21 = vpop.f32.mrb[2].mxu0 }
 0x171   :  { %v813_v22 = vpop.f32.mrb[3].mxu0 }
 0x172   :  { %v814_v23 = vadd.f32 %v813_v22, %v812_v21 }
 0x174   :  { %v414_v24 = vadd.f32 %v814_v23, %v344_v18 }
 0x176   :  { %v484_v25 = vadd.f32 %v483_v19, %v414_v24 }
 0x178   :  { %v487_v26 = vmax.f32 %v484_v25, 0.0 }
 0x17a   :  { %892 = vmatmul.mubr.f32.vlgmr.msra.gmra.mrb[4].mxu1 %v487_v26 }
 0x24d   :  { %v577_v30 = vpop.f32.mrb[4].mxu1 }
 0x24e   :  { %v578_v31 = vadd.f32 %v708_v29, %v577_v30  ;;  %v893_v32 = vpop.f32.mrb[5].mxu1 }
 0x250   :  { %v581_v33 = vmax.f32 %v578_v31, 0.0 }
 0x252   :  { %927 = vmatmul.mubr.f32.vlgmr.msra.gmra.mrb[4].mxu0 %v581_v33 }
 0x325   :  { %v671_v37 = vpop.f32.mrb[4].mxu0 }
 0x326   :  { %v672_v38 = vadd.f32 %v709_v36, %v671_v37  ;;  %v928_v39 = vpop.f32.mrb[5].mxu0 }
 0x328   :  { %v678_v40 = vsel %vm677_vm2, %v672_v38, -1e+30 }
 0x329   :  { %679 = vmax.xlane.f32.xlu0 %v678_v40 }
 0x3b6   :  { %v680_v41 = vpop.xlane.xlu0 %679 }
 0x3b7   :  { %v681_v42 = vsub.f32 %v678_v40, %v680_v41 }
 0x3b9   :  { %v682_v43 = vmul.f32 1.442695, %v681_v42 }
 0x3bb   :  { %1087 = vpow2.f32 %v682_v43 }
 0x3c5   :  { %v1088_v44 = vpop.eup %1087 }
 0x3c6   :  { %684 = vadd.xlane.f32.xlu0 %v1088_v44 }
 0x453   :  { %v685_v45 = vpop.xlane.xlu0 %684 }
 0x454   :  { %1089 = vrcp.f32 %v685_v45 }
 0x45e   :  { %v1090_v46 = vpop.eup %1089 }
 0x45f   :  { %v687_v47 = vmul.f32 %v1090_v46, %v1088_v44 }
 0x461   :  { %688 = vst [vmem:[#allocation11] sm:$0xff] %v687_v47 }
 0x462   :  { %1212 = shalt.err (!%p1209_p2)
}
 0x463   :  { %s1213_s21 = scalar_lea.hbm %s1396_s7, 128 }
 0x464   :  { %p1214_p3 = scmp.ne.s32.totalorder %s1396_s7, %s1213_s21  ;;  %p1217_p4 = scmp.lt.u32.totalorder %s1213_s21, %s1396_s7 }
 0x466   :  { %p1219_p5 = pnand %p1217_p4, %p1214_p3 }
 0x468   :  { %1222 = shalt.err (!%p1219_p5)
}
 0x469   :  { %698 = dma.vmem_to_hbm [thread:$0]  %s696_s17, 128, %s1396_s7, [#allocation4]  }
 0x46a   :  { %1229 = dma.done.wait [#allocation4], 128  }
 0x46b   :  { %1230 = vsyncadd [#allocation4], 4294967168 }
 0x46c   :  { %702 = vsyncpa [#allocation3], 1 }
 0x46d   :  { %703 = vsyncpa [#allocation6], 1 }
 0x46e   :  { %704 = vsyncpa [#allocation9], 1 }
 0x46f   :  { %705 = vsyncpa [#allocation4], 1 }

</bundles_post_ra>
